<compile_context>
chip_gen: v7x
topology: tpu7x:2x2x1
jax: 0.10.0
libtpu: 0.0.40
codegen_flags: <defaults>
</compile_context>

<pallas_src>
import functools

import jax
import jax.numpy as jnp
from jax.experimental import pallas as pl
from jax.experimental.pallas import tpu as pltpu


def _mlp(pooled_f32, w1_ref, b1_ref, w2_ref, b2_ref, out_dtype):
    """2-layer MLP on the pooled [TB, D] features (f32 accumulation on the MXU)."""
    # Layer 1: Linear + ReLU.
    h = jnp.dot(pooled_f32, w1_ref[...], preferred_element_type=jnp.float32)
    h = jnp.maximum(h + b1_ref[...].astype(jnp.float32), 0.0)   # b1 is [1, D], broadcasts
    # Layer 2: Linear (no activation on the final layer).
    out = jnp.dot(h, w2_ref[...], preferred_element_type=jnp.float32)
    out = out + b2_ref[...].astype(jnp.float32)
    return out.astype(out_dtype)


def _pool_tile(x, pooling):
    """Pool one (TB, TS, D) tile over the seq axis -> f32 [TB, D]."""
    if pooling == "max":
        # Reduce in the native dtype (bf16 VALU is native on v6e/v7x); only the small
        # pooled result is upcast to f32.
        return jnp.max(x, axis=1).astype(jnp.float32)
    elif pooling == "mean":
        # Sum in f32 so long sequences don't lose precision in bf16.
        return jnp.sum(x.astype(jnp.float32), axis=1)
    else:
        raise ValueError(f"unsupported pooling: {pooling}")


def _label_encoder_kernel_single(x_ref, w1_ref, b1_ref, w2_ref, b2_ref, o_ref,
                                 *, pooling, inv_s):
    """Whole sequence fits one tile: branch-free pool + MLP, no accumulator scratch."""
    pooled = _pool_tile(x_ref[...], pooling)
    if pooling == "mean":
        pooled = pooled * inv_s        # 1/S as a static constant (exact for pow-2 S,
                                       # otherwise within ~1 ulp of a true divide)
    o_ref[...] = _mlp(pooled, w1_ref, b1_ref, w2_ref, b2_ref, o_ref.dtype)


def _label_encoder_kernel_multi(x_ref, w1_ref, b1_ref, w2_ref, b2_ref, o_ref, acc_ref,
                                *, pooling, inv_s):
    """One (batch-tile, seq-tile) grid step; acc_ref is the running f32 max/sum."""
    s_idx = pl.program_id(1)

    tile_red = _pool_tile(x_ref[...], pooling)        # f32 [TB, D]

    @pl.when(s_idx == 0)
    def _():
        acc_ref[...] = tile_red

    @pl.when(s_idx != 0)
    def _():
        if pooling == "max":
            acc_ref[...] = jnp.maximum(acc_ref[...], tile_red)
        else:
            acc_ref[...] = acc_ref[...] + tile_red

    # Finalize on the last seq tile: apply the 2-layer MLP and store.
    @pl.when(s_idx == pl.num_programs(1) - 1)
    def _():
        pooled = acc_ref[...]
        if pooling == "mean":
            pooled = pooled * inv_s
        o_ref[...] = _mlp(pooled, w1_ref, b1_ref, w2_ref, b2_ref, o_ref.dtype)


# Per-block x payload cap: 16 MiB. Double-buffered (2x) + weights + acc + out stays
# under ~40 MiB, which fits v7x's 64 MiB physical VMEM and leaves pipeline headroom.
_MAX_X_BLOCK_BYTES = 16 * 1024 * 1024
_VMEM_LIMIT_CAP = 48 * 1024 * 1024


def _choose_tiles(B, S, D, itemsize, tb, ts):
    """Pick (tb, ts) honoring dtype-dependent sublane tiling and VMEM/megacore rules."""
    # Minimum sublane multiple per dtype (f32: 8, bf16: 16, int8/fp8: 32).
    sub = {4: 8, 2: 16, 1: 32}.get(itemsize, 8)

    # ---- batch tile: keep >= 2 batch blocks (v7x megacore) when B allows it. ----
    if tb is None:
        if B <= sub:
            tb = B
        elif B <= 2 * sub:
            tb = sub
        else:
            tb = min(128, max(sub, (B // 2) // sub * sub))
    tb = min(tb, B)
    # Output block is (tb, D): its sublane dim must be a multiple of `sub` or == B.
    if tb != B and tb % sub != 0:
        tb = B

    # ---- seq tile: grow ts first (contiguous DMA runs), up to the block-byte cap. ----
    if ts is None:
        ts_cap = max(sub, _MAX_X_BLOCK_BYTES // max(1, tb * D * itemsize))
        if S <= ts_cap:
            ts = S
        else:
            ts = 0
            cand = (ts_cap // sub) * sub
            # Largest multiple of `sub` that divides S exactly (so no padded garbage
            # ever enters the pooling reduction).
            while cand >= sub:
                if S % cand == 0:
                    ts = cand
                    break
                cand -= sub
            if ts == 0:
                ts = S   # awkward S (e.g. prime): fall back to the full sequence
    ts = min(ts, S)
    if S % ts != 0 or (ts % sub != 0 and ts != S):
        ts = S

    return tb, ts


def label_encoder_forward(x, w1, b1, w2, b2, *, pooling="max", tb=None, ts=None):
    """x: [B, S, D].  Returns [B, D] in x.dtype."""
    B, S, D = x.shape
    itemsize = jnp.dtype(x.dtype).itemsize
    wbytes = jnp.dtype(w1.dtype).itemsize

    tb, ts = _choose_tiles(B, S, D, itemsize, tb, ts)
    n_seq_tiles = S // ts

    # ---- VMEM budget: 2x double-buffered x block + double-buffered weights/biases
    #      + out block + f32 accumulator + compiler slack, clamped for v7x. ----
    x_block_bytes = tb * ts * D * itemsize
    w_block_bytes = 2 * (D * D + D) * wbytes
    out_block_bytes = tb * D * itemsize
    acc_bytes = tb * D * 4
    vmem_limit = (2 * x_block_bytes + 2 * w_block_bytes + 2 * out_block_bytes
                  + acc_bytes + (4 << 20))
    vmem_limit = min(max(vmem_limit, 16 << 20), _VMEM_LIMIT_CAP)

    cost = pl.CostEstimate(
        flops=4 * B * D * D + B * S * D,
        transcendentals=0,
        bytes_accessed=B * S * D * itemsize + 2 * D * D * wbytes
                       + 2 * D * wbytes + B * D * itemsize,
    )

    inv_s = 1.0 / S

    if n_seq_tiles == 1:
        # Whole sequence in one tile: 1-D grid, branch-free body, no scratch.
        grid = (pl.cdiv(B, tb),)
        x_map = lambda i: (i, 0, 0)
        w_map = lambda i: (0, 0)
        o_map = lambda i: (i, 0)
        kernel = functools.partial(_label_encoder_kernel_single,
                                   pooling=pooling, inv_s=inv_s)
        scratch = []
        dims = ("parallel",)
    else:
        # Streamed seq reduction: batch axis parallel, seq (reduction) axis last.
        grid = (pl.cdiv(B, tb), n_seq_tiles)
        x_map = lambda i, s: (i, s, 0)
        w_map = lambda i, s: (0, 0)
        o_map = lambda i, s: (i, 0)
        kernel = functools.partial(_label_encoder_kernel_multi,
                                   pooling=pooling, inv_s=inv_s)
        scratch = [pltpu.VMEM((tb, D), jnp.float32)]
        dims = ("parallel", "arbitrary")

    return pl.pallas_call(
        kernel,
        out_shape=jax.ShapeDtypeStruct((B, D), x.dtype),
        grid_spec=pltpu.PrefetchScalarGridSpec(
            num_scalar_prefetch=0,
            grid=grid,
            in_specs=[
                # x: streamed (tb, ts, D) tiles, double-buffered by BlockSpec.
                pl.BlockSpec((tb, ts, D), x_map),
                # Weights / biases: constant index_map -> fetched once, VMEM-resident.
                pl.BlockSpec((D, D), w_map),
                pl.BlockSpec((1, D), w_map),
                pl.BlockSpec((D, D), w_map),
                pl.BlockSpec((1, D), w_map),
            ],
            # Output block is constant along the seq (reduction) axis; full D per
            # block keeps stores lane-dense.
            out_specs=pl.BlockSpec((tb, D), o_map),
            scratch_shapes=scratch,
        ),
        compiler_params=pltpu.CompilerParams(
            dimension_semantics=dims,
            vmem_limit_bytes=vmem_limit,
        ),
        cost_estimate=cost,
    )(x, w1, b1, w2, b2)


def reference_forward(x, w1, b1, w2, b2, *, pooling="max"):
    """Pure-JAX reference matching the PyTorch semantics."""
    if pooling == "max":
        pooled = jnp.max(x, axis=1)
    elif pooling == "mean":
        pooled = jnp.mean(x, axis=1)
    else:
        raise ValueError(pooling)
    h = jnp.maximum(pooled @ w1 + b1[0], 0.0)
    return h @ w2 + b2[0]


if __name__ == "__main__":
    # label_config = {'pooling': ..., 'num_layers': 2, 'input_dim': 128, 'dropout': 0.0}
    B, S, D = 16, 16, 128   # batch, seq, input_dim

    key = jax.random.PRNGKey(0)
    kx, k1, k2, k3, k4 = jax.random.split(key, 5)

    x = jax.random.normal(kx, (B, S, D), dtype=jnp.float32)
    # Deterministic synthetic MLP parameters (input_dim == hidden_dim == output_dim).
    w1 = jax.random.normal(k1, (D, D), dtype=jnp.float32) * 0.02
    b1 = jax.random.normal(k2, (1, D), dtype=jnp.float32) * 0.02
    w2 = jax.random.normal(k3, (D, D), dtype=jnp.float32) * 0.02
    b2 = jax.random.normal(k4, (1, D), dtype=jnp.float32) * 0.02

    for pooling in ("max", "mean"):
        ref = reference_forward(x, w1, b1, w2, b2, pooling=pooling)

        # (a) Auto tiling: whole sequence in one tile -> branch-free single-pass body.
        out_a = label_encoder_forward(x, w1, b1, w2, b2, pooling=pooling)
        out_a = jax.block_until_ready(out_a)

        # (b) Forced tb=8, ts=8 -> grid (2, 2): exercises the batch pipeline and the
        # streamed seq reduction with the f32 accumulator scratch.
        out_b = label_encoder_forward(x, w1, b1, w2, b2, pooling=pooling, tb=8, ts=8)
        out_b = jax.block_until_ready(out_b)

        for out in (out_a, out_b):
            assert out.shape == (B, D), out.shape
            assert jnp.allclose(out, ref, atol=1e-5, rtol=1e-5), f"mismatch ({pooling})"

    print("KERNEL_OK")
</pallas_src>

<mosaic_0001>
module attributes {stable_mosaic.version = 11 : i64} {
  func.func @_label_encoder_kernel_single(%arg0: i32, %arg1: memref<8x16x128xf32, #tpu.memory_space<vmem>>, %arg2: memref<128x128xf32, #tpu.memory_space<vmem>>, %arg3: memref<1x128xf32, #tpu.memory_space<vmem>>, %arg4: memref<128x128xf32, #tpu.memory_space<vmem>>, %arg5: memref<1x128xf32, #tpu.memory_space<vmem>>, %arg6: memref<8x128xf32, #tpu.memory_space<vmem>>) attributes {dimension_semantics = [#tpu.dimension_semantics<parallel>], iteration_bounds = array<i64: 2>, scalar_prefetch = 0 : i64, scratch_operands = 0 : i64, tpu.core_type = #tpu.core_type<tc>, window_params = [{transform_indices = @transform_0, window_bounds = array<i64: 8, 16, 128>}, {pipeline_mode = #tpu.pipeline_mode<synchronous>, transform_indices = @transform_1, window_bounds = array<i64: 128, 128>}, {pipeline_mode = #tpu.pipeline_mode<synchronous>, transform_indices = @transform_2, window_bounds = array<i64: 1, 128>}, {pipeline_mode = #tpu.pipeline_mode<synchronous>, transform_indices = @transform_3, window_bounds = array<i64: 128, 128>}, {pipeline_mode = #tpu.pipeline_mode<synchronous>, transform_indices = @transform_4, window_bounds = array<i64: 1, 128>}, {transform_indices = @transform_5, window_bounds = array<i64: 8, 128>}]} {
    %c0 = arith.constant 0 : index
    %c0_0 = arith.constant 0 : index
    %c0_1 = arith.constant 0 : index
    %0 = vector.load %arg1[%c0, %c0_0, %c0_1] : memref<8x16x128xf32, #tpu.memory_space<vmem>>, vector<8x16x128xf32>
    %cst = arith.constant dense<0xFF800000> : vector<8x128xf32>
    %1 = vector.multi_reduction <maximumf>, %0, %cst [1] : vector<8x16x128xf32> to vector<8x128xf32>
    %c0_2 = arith.constant 0 : index
    %c0_3 = arith.constant 0 : index
    %2 = vector.load %arg2[%c0_2, %c0_3] : memref<128x128xf32, #tpu.memory_space<vmem>>, vector<128x128xf32>
    %cst_4 = arith.constant dense<0.000000e+00> : vector<8x128xf32>
    %3 = tpu.matmul %1, %2, %cst_4 {dimension_numbers = #tpu.dot_dimension_numbers<[1], [0], [0], [1], [0, 0, 1, 1], [], []>} : vector<8x128xf32>, vector<128x128xf32>, vector<8x128xf32> -> vector<8x128xf32>
    %c0_5 = arith.constant 0 : index
    %c0_6 = arith.constant 0 : index
    %4 = vector.load %arg3[%c0_5, %c0_6] : memref<1x128xf32, #tpu.memory_space<vmem>>, vector<1x128xf32>
    %5 = vector.broadcast %4 : vector<1x128xf32> to vector<8x128xf32>
    %6 = arith.addf %3, %5 : vector<8x128xf32>
    %cst_7 = arith.constant 0.000000e+00 : f32
    %7 = vector.broadcast %cst_7 : f32 to vector<8x128xf32>
    %8 = arith.maximumf %6, %7 : vector<8x128xf32>
    %c0_8 = arith.constant 0 : index
    %c0_9 = arith.constant 0 : index
    %9 = vector.load %arg4[%c0_8, %c0_9] : memref<128x128xf32, #tpu.memory_space<vmem>>, vector<128x128xf32>
    %cst_10 = arith.constant dense<0.000000e+00> : vector<8x128xf32>
    %10 = tpu.matmul %8, %9, %cst_10 {dimension_numbers = #tpu.dot_dimension_numbers<[1], [0], [0], [1], [0, 0, 1, 1], [], []>} : vector<8x128xf32>, vector<128x128xf32>, vector<8x128xf32> -> vector<8x128xf32>
    %c0_11 = arith.constant 0 : index
    %c0_12 = arith.constant 0 : index
    %11 = vector.load %arg5[%c0_11, %c0_12] : memref<1x128xf32, #tpu.memory_space<vmem>>, vector<1x128xf32>
    %12 = vector.broadcast %11 : vector<1x128xf32> to vector<8x128xf32>
    %13 = arith.addf %10, %12 : vector<8x128xf32>
    %c0_13 = arith.constant 0 : index
    %c0_14 = arith.constant 0 : index
    %14 = vector.load %arg6[%c0_13, %c0_14] : memref<8x128xf32, #tpu.memory_space<vmem>>, vector<8x128xf32>
    tpu.vector_store %arg6[%c0_13, %c0_14], %13 {strides = array<i32>} : memref<8x128xf32, #tpu.memory_space<vmem>>, vector<8x128xf32>,
    return
  }
  func.func @transform_0(%arg0: i32) -> (i32, i32, i32) {
    %c0_i32 = arith.constant 0 : i32
    %c0_i32_0 = arith.constant 0 : i32
    %c0_i32_1 = arith.constant 0 : i32
    return %arg0, %c0_i32, %c0_i32_0 : i32, i32, i32
  }
  func.func @transform_1(%arg0: i32) -> (i32, i32) {
    %c0_i32 = arith.constant 0 : i32
    %c0_i32_0 = arith.constant 0 : i32
    %c0_i32_1 = arith.constant 0 : i32
    return %c0_i32, %c0_i32_0 : i32, i32
  }
  func.func @transform_2(%arg0: i32) -> (i32, i32) {
    %c0_i32 = arith.constant 0 : i32
    %c0_i32_0 = arith.constant 0 : i32
    %c0_i32_1 = arith.constant 0 : i32
    return %c0_i32, %c0_i32_0 : i32, i32
  }
  func.func @transform_3(%arg0: i32) -> (i32, i32) {
    %c0_i32 = arith.constant 0 : i32
    %c0_i32_0 = arith.constant 0 : i32
    %c0_i32_1 = arith.constant 0 : i32
    return %c0_i32, %c0_i32_0 : i32, i32
  }
  func.func @transform_4(%arg0: i32) -> (i32, i32) {
    %c0_i32 = arith.constant 0 : i32
    %c0_i32_0 = arith.constant 0 : i32
    %c0_i32_1 = arith.constant 0 : i32
    return %c0_i32, %c0_i32_0 : i32, i32
  }
  func.func @transform_5(%arg0: i32) -> (i32, i32) {
    %c0_i32 = arith.constant 0 : i32
    %c0_i32_0 = arith.constant 0 : i32
    return %arg0, %c0_i32 : i32, i32
  }
}

</mosaic_0001>

<bundles_post_ra>
// kernel: tpu_custom_call.1
= control target key start
LH: loop header
LB: loop body
LE: loop exit
PB: predicated region body
PF: predicated region fallthrough
CT: control target
= control target key end

     0   :  { %10 = vsyncpa [#allocation3], 0  ;;  %s1404_s0 = inlined_call_operand.hbm [shape: f32[16,16,128], index: 0, kind: input, shape index: {}]   ;;  %s1405_s1 = inlined_call_operand.hbm [shape: f32[128,128], index: 1, kind: input, shape index: {}]   ;;  %s1406_s2 = inlined_call_operand.vmem [shape: f32[1,128], index: 2, kind: input, shape index: {}]   ;;  %s1407_s3 = inlined_call_operand.hbm [shape: f32[128,128], index: 3, kind: input, shape index: {}]   ;;  %s1408_s4 = inlined_call_operand.vmem [shape: f32[1,128], index: 4, kind: input, shape index: {}]   ;;  %s1409_s5 = inlined_call_operand.hbm [shape: f32[16,128], index: 5, kind: output, shape index: {}]  }
   0x1   :  { %12 = vsyncpa [#allocation3 + $0x1], 0 }
   0x2   :  { %13 = vsyncpa [#allocation6], 0 }
   0x3   :  { %14 = vsyncpa [#allocation4], 0 }
   0x4   :  { %16 = vsyncpa [#allocation4 + $0x1], 0  ;;  %s1103_s18 = smov 0   ;;  %s1105_s19 = smov 0  }
   0x5   :  { %s1107_s20 = smov 0   ;;  %s1109_s21 = smov 0  }
   0x6 LB: > { %s1124_s22 = sadd.s32 4294967295, %s1062_s21   ;;  %s660_s23 = sadd.s32 4294967294, %s1062_s21   ;;  %s1062_s21 = sphi %s1109_s21, %s1429_s21   ;;  %s1058_s20 = sphi %s1107_s20, %s1428_s20   ;;  %s1054_s19 = sphi %s1105_s19, %s1427_s19   ;;  %s1050_s18 = sphi %s1103_s18, %s1426_s18  }
   0x7   : > { %p42_p0 = scmp.ne.s32.totalorder %s1054_s19, %s1050_s18  ;;  %p1410_p1 = scmp.eq.s32.totalorder %s1124_s22, 0 }
   0x8   : > { %p156_p3 = scmp.eq.s32.totalorder %s660_s23, 1  ;;  %p661_p5 = scmp.ge.s32.totalorder %s1062_s21, 1 }
   0x9   : > { %p1133_p4 = por %p1410_p1, %p42_p0  ;;  %p163_p7 = scmp.lt.s32.totalorder %s1062_s21, 3 }
   0xa   : > { %p1138_p6 = por %p156_p3, %p42_p0  ;;  %s1064_s27 = smov [#allocation5]  }
   0xb   : > { %s1413_s24 = scalar_select %p1133_p4, 1, 0 }
   0xc   : > { %s1414_s25 = scalar_select %p1138_p6, 1, 0 }
   0xd   : > { %p1143_p8 = pnand %p661_p5, %p163_p7  ;;  %s175_s28 = sshll.u32 %s1064_s27, 4  ;;  %s1147_s28 = int_to_ptr.vmem [resolvable:$true] %s175_s28 }
   0xe   : > { %s1065_s30 = smov [#allocation7]   ;;  %s906_s9 = scalar_lea.hbm %s1405_s1, 2048 }
   0xf   : > { %p846_p9 = pneg %p1143_p8  ;;  %s191_s6 = sshll.u32 %s1065_s30, 4  ;;  %s1158_s6 = int_to_ptr.vmem [resolvable:$true] %s191_s6 }
  0x10   : > { %p907_p12 = scmp.ne.s32.totalorder %s1405_s1, %s906_s9  ;;  %p913_p5 = scmp.lt.u32.totalorder %s906_s9, %s1405_s1 }
  0x11   : > { %p1154_p11 = pnand %p846_p9, %p1410_p1 }
  0x13   : > { %p908_p13 = pneg %p1154_p11 }
  0x15   : > { %p909_p0 = pnand %p908_p13, %p907_p12 }
  0x17   : > { %p910_p3 = pneg %p909_p0 }
  0x19   : > { %p915_p7 = pnand %p913_p5, %p910_p3 }
  0x1b   : > { %918 = shalt.err (!%p915_p7)
}
  0x1c   : > { %s919_s14 = scalar_lea.vmem %s1147_s28, 2048  ;;  %p927_p2 = scmp.lt.s32.totalorder %s1147_s28, %s1147_s28 }
  0x1d   : > { %p920_p9 = scmp.ne.s32.totalorder %s1147_s28, %s919_s14  ;;  %p928_p12 = scmp.lt.s32.totalorder %s919_s14, %s919_s14 }
  0x1f   : > { %p922_p10 = pnand %p920_p9, %p908_p13  ;;  %p929_p0 = por %p928_p12, %p927_p2 }
  0x21   : > { %p923_p1 = pneg %p922_p10 }
  0x23   : > { %p930_p6 = pnand %p929_p0, %p923_p1 }
  0x25   : > { %933 = shalt.err (!%p930_p6)
}
  0x26   : > { %s1066_s15 = smov 128   ;;  %s1067_s16 = smov 8  }
  0x27   : > { %849 = dma.hbm_to_vmem [thread:$0]  (!%p1154_p11), %s1405_s1, 2048, %s1147_s28, [#allocation6], %s1066_s15, %s1066_s15, %s1067_s16  }
  0x28   : > { %s934_s7 = scalar_lea.hbm %s1407_s3, 2048 }
  0x29   : > { %p935_p1 = scmp.ne.s32.totalorder %s1407_s3, %s934_s7  ;;  %p941_p10 = scmp.lt.u32.totalorder %s934_s7, %s1407_s3 }
  0x2b   : > { %p937_p2 = pnand %p935_p1, %p908_p13 }
  0x2d   : > { %p938_p6 = pneg %p937_p2 }
  0x2f   : > { %p943_p3 = pnand %p941_p10, %p938_p6 }
  0x31   : > { %946 = shalt.err (!%p943_p3)
}
  0x32   : > { %s947_s28 = scalar_lea.vmem %s1158_s6, 2048  ;;  %p955_p12 = scmp.lt.s32.totalorder %s1158_s6, %s1158_s6 }
  0x33   : > { %p948_p5 = scmp.ne.s32.totalorder %s1158_s6, %s947_s28  ;;  %p956_p0 = scmp.lt.s32.totalorder %s947_s28, %s947_s28 }
  0x35   : > { %p950_p7 = pnand %p948_p5, %p908_p13  ;;  %p957_p1 = por %p956_p0, %p955_p12 }
  0x37   : > { %p951_p9 = pneg %p950_p7 }
  0x39   : > { %p958_p2 = pnand %p957_p1, %p951_p9 }
  0x3b   : > { %961 = shalt.err (!%p958_p2)
}
  0x3c   : > { %852 = dma.hbm_to_vmem [thread:$0]  (!%p1154_p11), %s1407_s3, 2048, %s1158_s6, [#allocation6], %s1066_s15, %s1066_s15, %s1067_s16  }
  0x3d   : > { %s1219_s29 = sadd.s32 1, %s1062_s21   ;;  %s29_s14 = sadd.s32 1, %s1058_s20 }
  0x3e   : > { %s26_s17 = ssub.s32 %s1062_s21, %s1219_s29  ;;  %p36_p13 = scmp.ne.s32.totalorder %s1058_s20, %s1054_s19 }
  0x3f   : > { %p27_p6 = scmp.eq.s32.totalorder %s26_s17, 0  ;;  %p37_p10 = scmp.eq.s32.totalorder %s1062_s21, 0 }
  0x40   : > { %p1417_p3 = scmp.eq.s32.totalorder %s1124_s22, 1  ;;  %p863_p7 = scmp.lt.s32.totalorder %s1062_s21, 2 }
  0x41   : > { %s1235_s27 = scalar_select %p27_p6, %s1058_s20, %s29_s14  }
  0x42   : > { %p1229_p5 = por %p1417_p3, %p36_p13  ;;  %p38_p9 = por %p37_p10, %p36_p13 }
  0x43   : > { %s208_s30 = sand.u32 1, %s1058_s20   ;;  %s681_s6 = sshll.u32 %s1062_s21, 11 }
  0x44   : > { %s1418_s23 = scalar_select %p1229_p5, 1, 0 }
  0x45   : > { %s665_s7 = sshll.u32 %s208_s30, 7  ;;  %s1242_s10 = scalar_lea.hbm %s1404_s0, %s681_s6 }
  0x46   : > { %s212_s11 = scalar_lea.vmem [#allocation2], %s665_s7  ;;  %p1246_p11 = pnand %p863_p7, %p38_p9 }
  0x47   : > { %s220_s28 = sshll.u32 %s212_s11, 4  ;;  %s1250_s13 = scalar_lea.sflag [#allocation3], %s208_s30  ;;  %s1244_s28 = int_to_ptr.vmem [resolvable:$true] %s220_s28 }
  0x48   : > { %s962_s14 = scalar_lea.hbm %s1242_s10, 2048  ;;  %p964_p0 = pneg %p1246_p11 }
  0x49   : > { %p963_p12 = scmp.ne.s32.totalorder %s1242_s10, %s962_s14  ;;  %s967_s6 = scalar_lea.hbm %s1404_s0, 4096 }
  0x4a   : > { %p968_p13 = scmp.lt.u32.totalorder %s1242_s10, %s1404_s0  ;;  %p969_p6 = scmp.lt.u32.totalorder %s967_s6, %s962_s14 }
  0x4b   : > { %p965_p1 = pnand %p964_p0, %p963_p12  ;;  %p971_p3 = scmp.lt.u32.totalorder %s962_s14, %s1242_s10 }
  0x4c   : > { %p970_p10 = por %p969_p6, %p968_p13 }
  0x4d   : > { %p966_p2 = pneg %p965_p1 }
  0x4e   : > { %p972_p7 = por %p971_p3, %p970_p10 }
  0x50   : > { %p973_p9 = pnand %p972_p7, %p966_p2 }
  0x52   : > { %976 = shalt.err (!%p973_p9)
}
  0x53   : > { %s977_s30 = scalar_lea.vmem %s1244_s28, 2048  ;;  %s1068_s11 = smov [#allocation2]  }
  0x54   : > { %p978_p12 = scmp.ne.s32.totalorder %s1244_s28, %s977_s30  ;;  %s982_s17 = sshll.u32 %s1068_s11, 4  ;;  %s983_s17 = int_to_ptr.vmem [resolvable:$false] %s982_s17 }
  0x55   : > { %s984_s7 = scalar_lea.vmem %s983_s17, 4096  ;;  %p985_p4 = scmp.lt.s32.totalorder %s1244_s28, %s983_s17 }
  0x56   : > { %p980_p1 = pnand %p978_p12, %p964_p0  ;;  %p986_p13 = scmp.lt.s32.totalorder %s984_s7, %s977_s30 }
  0x58   : > { %p981_p5 = pneg %p980_p1  ;;  %p987_p6 = por %p986_p13, %p985_p4 }
  0x5a   : > { %p988_p10 = pnand %p987_p6, %p981_p5 }
  0x5c   : > { %991 = shalt.err (!%p988_p10)
}
  0x5d   : > { %856 = dma.hbm_to_vmem [thread:$0]  (!%p1246_p11), %s1242_s10, 2048, %s1244_s28, %s1250_s13, %s1066_s15, %s1066_s15, %s1067_s16  }
  0x5e   : > { %232 = sbr.rel (%p1143_p8) target bundleno = 583 (0x247), region = 40  ;;  %s1284_s14 = sand.u32 (!%p1143_p8), 1, %s1054_s19  }
  0x5f   : > { %s670_s6 = sshll.u32 (!%p1143_p8), %s1284_s14, 7  ;;  %s235_s8 = scalar_lea.sflag (!%p1143_p8), [#allocation3], %s1284_s14 }
  0x60   : > { %s1288_s9 = scalar_lea.vmem (!%p1143_p8), [#allocation2], %s670_s6  ;;  %p1420_p4 = scmp.ne.s32.totalorder (!%p1143_p8), %s1413_s24, 0 }
  0x65   : > { %1037 = dma.done.wait (%p1420_p4), %s235_s8, 2048  }
  0x66   : > { %1039 = vsyncadd (%p1420_p4), %s235_s8, 4294965248  ;;  %p1421_p5 = scmp.eq.s32.totalorder %s1124_s22, 0 }
  0x68   : > { %1041 = dma.done.wait (%p1421_p5), [#allocation6], 4096   ;;  %p1422_p8 = pmov %p1421_p5 }
  0x69   : > { %v1069_v0 = vmov 0.0|0.0   ;;  %vm1070_vm0 = vmmov 0   ;;  %v1071_v1 = vmov 0.0   ;;  %v346_v2 = vld [vmem:[#allocation5] sm:$0xff]  ;;  %v347_v3 = vld [vmem:[#allocation5 + $0x8] sm:$0xff]  ;;  %v348_v4 = vld [vmem:[#allocation5 + $0x10] sm:$0xff] }
  0x6a   : > { %1043 = vsyncadd (%p1422_p8), [#allocation6], 4294963200  ;;  %786 = vmatprep.subr.bf16.mxu0 %v1069_v0  ;;  %748 = vmatprep.mubr.msk.f32.mxu0 %vm1070_vm0, %v1071_v1  ;;  %v787_v5 = vpack.c.bf16 %v347_v3, %v346_v2  ;;  %v349_v6 = vld [vmem:[#allocation5 + $0x18] sm:$0xff]  ;;  %v350_v7 = vld [vmem:[#allocation5 + $0x20] sm:$0xff]  ;;  %vm377_vm1 = vcmask 1041409   ;;  %vm379_vm2 = vcmask 1042434  }
  0x6b   : > { %810 = vmatprep.subr.bf16.mxu1 %v1069_v0  ;;  %783 = vmatprep.mubr.msk.f32.mxu1 %vm1070_vm0, %v1071_v1  ;;  %v790_v8 = vpack.c.bf16 %v349_v6, %v348_v4  ;;  %v351_v9 = vld [vmem:[#allocation5 + $0x28] sm:$0xff]  ;;  %v352_v10 = vld [vmem:[#allocation5 + $0x30] sm:$0xff]  ;;  %v353_v11 = vld [vmem:[#allocation5 + $0x38] sm:$0xff]  ;;  %vm381_vm3 = vcmask 1043459   ;;  %vm383_vm4 = vcmask 1044484   ;;  %vm385_vm5 = vcmask 1045509  }
  0x6c   : > { %788 = vmatpush3.bf16.msra.mxu0 %v787_v5  ;;  %v1301_v12 = vld [vmem:[#allocation5 + $0x40] sm:$0xff]  ;;  %v1303_v13 = vld [vmem:[#allocation5 + $0x48] sm:$0xff]  ;;  %v1305_v14 = vld [vmem:[#allocation5 + $0x50] sm:$0xff]  ;;  %v793_v22 = vpack.c.bf16 %v351_v9, %v350_v7  ;;  %v796_v27 = vpack.c.bf16 %v353_v11, %v352_v10  ;;  %vm387_vm6 = vcmask 1046534   ;;  %vm389_vm7 = vcmask 1047559   ;;  %s673_s15 = sshll.u32 %s1284_s14, 3 }
  0x6d   : > { %789 = vmatprep.subr.bf16.mxu0 %v1069_v0  ;;  %v1307_v15 = vld [vmem:[#allocation5 + $0x58] sm:$0xff]  ;;  %v274_v16 = vld [vmem:[%s1288_s9] sm:$0xff]  ;;  %v275_v17 = vld [vmem:[%s1288_s9 + $0x8] sm:$0xff]  ;;  %v799_v34 = vpack.c.bf16 %v1303_v13, %v1301_v12  ;;  %s677_s28 = sshll.u32 %s1124_s22, 7  ;;  %s272_s12 = scalar_lea.vmem [#allocation8], %s673_s15 }
  0x6e   : > { %v276_v18 = vld [vmem:[%s1288_s9 + $0x10] sm:$0xff]  ;;  %v277_v19 = vld [vmem:[%s1288_s9 + $0x18] sm:$0xff]  ;;  %v278_v20 = vld [vmem:[%s1288_s9 + $0x20] sm:$0xff]  ;;  %v290_v21 = vmax.f32 %v274_v16, %v275_v17  ;;  %v802_v35 = vpack.c.bf16 %v1307_v15, %v1305_v14  ;;  %s571_s13 = sshll.u32 %s272_s12, 4  ;;  %s1360_s17 = scalar_lea.hbm %s1409_s5, %s677_s28  ;;  %s1362_s13 = int_to_ptr.vmem [resolvable:$true] %s571_s13 }
  0x6f   : > { %v279_v23 = vld [vmem:[%s1288_s9 + $0x28] sm:$0xff]  ;;  %v280_v24 = vld [vmem:[%s1288_s9 + $0x30] sm:$0xff]  ;;  %v281_v25 = vld [vmem:[%s1288_s9 + $0x38] sm:$0xff]  ;;  %v297_v26 = vmax.f32 %v276_v18, %v277_v19  ;;  %s558_s7 = scalar_lea.sflag [#allocation4], %s1284_s14  ;;  %s992_s6 = scalar_lea.vmem %s1362_s13, 128 }
  0x70   : > { %791 = vmatpush3.bf16.msra.mxu0 %v790_v8  ;;  %v282_v28 = vld [vmem:[%s1288_s9 + $0x40] sm:$0xff]  ;;  %v283_v29 = vld [vmem:[%s1288_s9 + $0x48] sm:$0xff]  ;;  %v284_v30 = vld [vmem:[%s1288_s9 + $0x50] sm:$0xff]  ;;  %v291_v31 = vrot.slane %v290_v21, 4  ;;  %v304_v32 = vmax.f32 %v278_v20, %v279_v23  ;;  %v311_v33 = vmax.f32 %v280_v24, %v281_v25  ;;  %p993_p11 = scmp.ne.s32.totalorder %s1362_s13, %s992_s6  ;;  %p1423_p0 = scmp.ne.s32.totalorder %s1418_s23, 0 }
  0x71   : > { %792 = vmatprep.subr.bf16.mxu0 %v1069_v0  ;;  %v285_v36 = vld [vmem:[%s1288_s9 + $0x58] sm:$0xff]  ;;  %v286_v37 = vld [vmem:[%s1288_s9 + $0x60] sm:$0xff]  ;;  %v287_v38 = vld [vmem:[%s1288_s9 + $0x68] sm:$0xff]  ;;  %v298_v39 = vrot.slane %v297_v26, 4  ;;  %v318_v40 = vmax.f32 %v282_v28, %v283_v29  ;;  %s1072_s22 = smov [#allocation8]  }
  0x72   : > { %v288_v41 = vld [vmem:[%s1288_s9 + $0x70] sm:$0xff]  ;;  %v289_v42 = vld [vmem:[%s1288_s9 + $0x78] sm:$0xff]  ;;  %v292_v43 = vmax.f32 %v290_v21, %v291_v31  ;;  %v305_v44 = vrot.slane %v304_v32, 4  ;;  %v312_v45 = vrot.slane %v311_v33, 4  ;;  %v325_v46 = vmax.f32 %v284_v30, %v285_v36  ;;  %v463_v12 = vld [vmem:[#allocation7] sm:$0xff]  ;;  %p994_p2 = pnand %p993_p11, %p1423_p0  ;;  %s996_s8 = sshll.u32 %s1072_s22, 4  ;;  %s997_s8 = int_to_ptr.vmem [resolvable:$false] %s996_s8 }
  0x73   : > { %v299_v47 = vmax.f32 %v297_v26, %v298_v39  ;;  %v319_v48 = vrot.slane %v318_v40, 4  ;;  %v332_v49 = vmax.f32 %v286_v37, %v287_v38  ;;  %v339_v50 = vmax.f32 %v288_v41, %v289_v42  ;;  %v464_v13 = vld [vmem:[#allocation7 + $0x8] sm:$0xff]  ;;  %v465_v24 = vld [vmem:[#allocation7 + $0x10] sm:$0xff]  ;;  %v466_v25 = vld [vmem:[#allocation7 + $0x18] sm:$0xff]  ;;  %s998_s9 = scalar_lea.vmem %s997_s8, 256  ;;  %p999_p7 = scmp.lt.s32.totalorder %s1362_s13, %s997_s8 }
  0x74   : > { %794 = vmatpush3.bf16.msra.mxu0 %v793_v22  ;;  %v293_v51 = vrot.slane %v292_v43, 2  ;;  %v306_v52 = vmax.f32 %v304_v32, %v305_v44  ;;  %v313_v53 = vmax.f32 %v311_v33, %v312_v45  ;;  %v326_v54 = vrot.slane %v325_v46, 4  ;;  %v358_v26 = vld [vmem:[#allocation5 + $0x60] sm:$0xff]  ;;  %v360_v44 = vld [vmem:[#allocation5 + $0x70] sm:$0xff]  ;;  %v361_v45 = vld [vmem:[#allocation5 + $0x78] sm:$0xff]  ;;  %p995_p3 = pneg %p994_p2  ;;  %p1000_p9 = scmp.lt.s32.totalorder %s998_s9, %s992_s6 }
  0x75   : > { %795 = vmatprep.subr.bf16.mxu0 %v1069_v0  ;;  %v300_v55 = vrot.slane %v299_v47, 2  ;;  %v320_v56 = vmax.f32 %v318_v40, %v319_v48  ;;  %v333_v57 = vrot.slane %v332_v49, 4  ;;  %v340_v58 = vrot.slane %v339_v50, 4  ;;  %v467_v42 = vld [vmem:[#allocation7 + $0x20] sm:$0xff] }
  0x76   : > { %v294_v59 = vmax.f32 %v292_v43, %v293_v51  ;;  %v307_v60 = vrot.slane %v306_v52, 2  ;;  %v314_v61 = vrot.slane %v313_v53, 2  ;;  %v327_v62 = vmax.f32 %v325_v46, %v326_v54  ;;  %v468_v43 = vld [vmem:[#allocation7 + $0x28] sm:$0xff]  ;;  %v471_v54 = vld [vmem:[#allocation7 + $0x40] sm:$0xff]  ;;  %p1001_p12 = por %p1000_p9, %p999_p7 }
  0x77   : > { %v301_v63 = vmax.f32 %v299_v47, %v300_v55  ;;  %v321_v1 = vrot.slane %v320_v56, 2  ;;  %v334_v2 = vmax.f32 %v332_v49, %v333_v57  ;;  %v341_v3 = vmax.f32 %v339_v50, %v340_v58  ;;  %v469_v49 = vld [vmem:[#allocation7 + $0x30] sm:$0xff]  ;;  %v470_v50 = vld [vmem:[#allocation7 + $0x38] sm:$0xff]  ;;  %v472_v55 = vld [vmem:[#allocation7 + $0x48] sm:$0xff] }
  0x78   : > { %797 = vmatpush3.bf16.msra.mxu0 %v796_v27  ;;  %v295_v4 = vrot.slane %v294_v59, 1  ;;  %v308_v5 = vmax.f32 %v306_v52, %v307_v60  ;;  %v315_v6 = vmax.f32 %v313_v53, %v314_v61  ;;  %v328_v7 = vrot.slane %v327_v62, 2  ;;  %v359_v27 = vld [vmem:[#allocation5 + $0x68] sm:$0xff]  ;;  %v473_v57 = vld [vmem:[#allocation7 + $0x50] sm:$0xff]  ;;  %v474_v58 = vld [vmem:[#allocation7 + $0x58] sm:$0xff]  ;;  %p1002_p1 = pnand %p1001_p12, %p995_p3 }
  0x79   : > { %798 = vmatprep.subr.bf16.mxu0 %v1069_v0  ;;  %v302_v8 = vrot.slane %v301_v63, 1  ;;  %v322_v9 = vmax.f32 %v320_v56, %v321_v1  ;;  %v335_v10 = vrot.slane %v334_v2, 2  ;;  %v342_v11 = vrot.slane %v341_v3, 2  ;;  %v475_v60 = vld [vmem:[#allocation7 + $0x60] sm:$0xff]  ;;  %v476_v61 = vld [vmem:[#allocation7 + $0x68] sm:$0xff]  ;;  %v478_v1 = vld [vmem:[#allocation7 + $0x78] sm:$0xff] }
  0x7a   : > { %v296_v16 = vmax.f32 %v294_v59, %v295_v4  ;;  %v309_v17 = vrot.slane %v308_v5, 1  ;;  %v316_v18 = vrot.slane %v315_v6, 1  ;;  %v329_v19 = vmax.f32 %v327_v62, %v328_v7 }
  0x7b   : > { %v303_v20 = vmax.f32 %v301_v63, %v302_v8  ;;  %v323_v21 = vrot.slane %v322_v9, 1  ;;  %v336_v22 = vmax.f32 %v334_v2, %v335_v10  ;;  %v343_v23 = vmax.f32 %v341_v3, %v342_v11  ;;  %v477_v63 = vld [vmem:[#allocation7 + $0x70] sm:$0xff]  ;;  %v674_v3 = vld [vmem:[%s1406_s2] ss:$0 sm:$0xff] }
  0x7c   : > { %800 = vmatpush3.bf16.msra.mxu0 %v799_v34  ;;  %v310_v28 = vmax.f32 %v308_v5, %v309_v17  ;;  %v317_v29 = vmax.f32 %v315_v6, %v316_v18  ;;  %v330_v30 = vrot.slane %v329_v19, 1  ;;  %v811_v31 = vpack.c.bf16 %v464_v13, %v463_v12 }
  0x7d   : > { %801 = vmatprep.subr.bf16.mxu0 %v1069_v0  ;;  %v324_v32 = vmax.f32 %v322_v9, %v323_v21  ;;  %v337_v33 = vrot.slane %v336_v22, 1  ;;  %v378_v36 = vsel %vm377_vm1, %v303_v20, %v296_v16  ;;  %v814_v38 = vpack.c.bf16 %v466_v25, %v465_v24 }
  0x7e   : > { %v331_v34 = vmax.f32 %v329_v19, %v330_v30  ;;  %v380_v37 = vsel %vm379_vm2, %v310_v28, %v378_v36  ;;  %812 = vmatpush3.bf16.msra.mxu1 %v811_v31  ;;  %v805_v39 = vpack.c.bf16 %v359_v27, %v358_v26  ;;  %v344_v40 = vrot.slane %v343_v23, 1 }
  0x7f   : > { %v382_v41 = vsel %vm381_vm3, %v317_v29, %v380_v37  ;;  %813 = vmatprep.subr.bf16.mxu1 %v1069_v0  ;;  %v338_v46 = vmax.f32 %v336_v22, %v337_v33  ;;  %v817_v14 = vpack.c.bf16 %v468_v43, %v467_v42  ;;  %v808_v15 = vpack.c.bf16 %v361_v45, %v360_v44 }
  0x80   : > { %803 = vmatpush3.bf16.msra.mxu0 %v802_v35  ;;  %v384_v47 = vsel %vm383_vm4, %v324_v32, %v382_v41  ;;  %v345_v35 = vmax.f32 %v343_v23, %v344_v40  ;;  %v820_v52 = vpack.c.bf16 %v470_v50, %v469_v49  ;;  %v823_v56 = vpack.c.bf16 %v472_v55, %v471_v54 }
  0x81   : > { %804 = vmatprep.subr.bf16.mxu0 %v1069_v0  ;;  %v386_v48 = vsel %vm385_vm5, %v331_v34, %v384_v47  ;;  %v826_v59 = vpack.c.bf16 %v474_v58, %v473_v57  ;;  %v829_v62 = vpack.c.bf16 %v476_v61, %v475_v60  ;;  %v832_v2 = vpack.c.bf16 %v478_v1, %v477_v63 }
  0x82   : > { %815 = vmatpush3.bf16.msra.mxu1 %v814_v38  ;;  %v388_v51 = vsel %vm387_vm6, %v338_v46, %v386_v48 }
  0x83   : > { %816 = vmatprep.subr.bf16.mxu1 %v1069_v0  ;;  %v390_v53 = vsel %vm389_vm7, %v345_v35, %v388_v51 }
  0x84   : > { %806 = vmatpush3.bf16.msra.mxu0 %v805_v39 }
  0x85   : > { %807 = vmatprep.subr.bf16.mxu0 %v1069_v0 }
  0x86   : > { %818 = vmatpush3.bf16.msra.mxu1 %v817_v14 }
  0x87   : > { %819 = vmatprep.subr.bf16.mxu1 %v1069_v0 }
  0x88   : > { %809 = vmatpush3.bf16.msra.mxu0 %v808_v15 }
  0x8a   : > { %821 = vmatpush3.bf16.msra.mxu1 %v820_v52 }
  0x8b   : > { %749 = vmatmul.mubr.f32.vlgmr.msra.gmra.mrb[0].mxu0 %v390_v53  ;;  %822 = vmatprep.subr.bf16.mxu1 %v1069_v0 }
  0x8e   : > { %824 = vmatpush3.bf16.msra.mxu1 %v823_v56 }
  0x8f   : > { %825 = vmatprep.subr.bf16.mxu1 %v1069_v0 }
  0x92   : > { %827 = vmatpush3.bf16.msra.mxu1 %v826_v59 }
  0x93   : > { %828 = vmatprep.subr.bf16.mxu1 %v1069_v0 }
  0x96   : > { %830 = vmatpush3.bf16.msra.mxu1 %v829_v62 }
  0x97   : > { %831 = vmatprep.subr.bf16.mxu1 %v1069_v0  ;;  %v675_v0 = vld [vmem:[%s1408_s4] ss:$0 sm:$0xff] }
  0x9a   : > { %833 = vmatpush3.bf16.msra.mxu1 %v832_v2 }
 0x15e   : > { %v458_v4 = vpop.f32.mrb[0].mxu0 }
 0x15f   : > { %v459_v5 = vadd.f32 %v674_v3, %v458_v4  ;;  %v750_v6 = vpop.f32.mrb[1].mxu0 }
 0x161   : > { %v462_v7 = vmax.f32 %v459_v5, 0.0 }
 0x163   : > { %784 = vmatmul.mubr.f32.vlgmr.msra.gmra.mrb[0].mxu1 %v462_v7 }
 0x236   : > { %v552_v8 = vpop.f32.mrb[0].mxu1 }
 0x237   : > { %v553_v9 = vadd.f32 %v675_v0, %v552_v8  ;;  %v785_v10 = vpop.f32.mrb[1].mxu1 }
 0x239   : > { %556 = vst [vmem:[%s272_s12] sm:$0xff] %v553_v9 }
 0x23a   : > { %1005 = shalt.err (!%p1002_p1)
}
 0x23b   : > { %s1006_s14 = scalar_lea.hbm %s1360_s17, 128  ;;  %s1010_s15 = scalar_lea.hbm %s1409_s5, 256 }
 0x23c   : > { %p1007_p13 = scmp.ne.s32.totalorder %s1360_s17, %s1006_s14  ;;  %p1011_p4 = scmp.lt.u32.totalorder %s1360_s17, %s1409_s5 }
 0x23d   : > { %p1012_p5 = scmp.lt.u32.totalorder %s1010_s15, %s1006_s14  ;;  %p1014_p11 = scmp.lt.u32.totalorder %s1006_s14, %s1360_s17 }
 0x23e   : > { %p1008_p6 = pnand %p1007_p13, %p1423_p0 }
 0x23f   : > { %p1013_p8 = por %p1012_p5, %p1011_p4 }
 0x240   : > { %p1009_p10 = pneg %p1008_p6 }
 0x241   : > { %p1015_p2 = por %p1014_p11, %p1013_p8 }
 0x243   : > { %p1016_p3 = pnand %p1015_p2, %p1009_p10 }
 0x245   : > { %1019 = shalt.err (!%p1016_p3)
}
 0x246   : > { %844 = dma.vmem_to_hbm [thread:$0]  (%p1423_p0), %s1362_s13, 128, %s1360_s17, %s558_s7  }
 0x247 PF: > { %s583_s28 = sand.u32 1, %s1050_s18   ;;  %p1424_p7 = scmp.ne.s32.totalorder %s1414_s25, 0 }
 0x248   : > { %p1425_p9 = scmp.ge.s32.totalorder %s1062_s21, 2  ;;  %s584_s12 = scalar_lea.sflag [#allocation4], %s583_s28 }
 0x24a   : > { %p858_p12 = pnand %p1425_p9, %p1424_p7 }
 0x24c   : > { %1045 = dma.done.wait (!%p858_p12), %s584_s12, 128  }
 0x24d   : > { %1047 = vsyncadd (!%p858_p12), %s584_s12, 4294967168  ;;  %p19_p1 = scmp.ge.s32.totalorder %s1219_s29, 4   ;;  %s1426_s18 = smov %s1054_s19 }
 0x24e   : > { %s1427_s19 = smov %s1058_s20  ;;  %s1428_s20 = smov %s1235_s27 }
 0x24f   : > { %s1429_s21 = smov %s1219_s29  ;;  %21 = sbr.rel (!%p19_p1) target bundleno = 6 (0x6), region = 93 }
 0x256   :  { %589 = vsyncpa [#allocation3], 1 }
 0x257   :  { %591 = vsyncpa [#allocation3 + $0x1], 1 }
 0x258   :  { %592 = vsyncpa [#allocation6], 1 }
 0x259   :  { %593 = vsyncpa [#allocation4], 1 }
 0x25a   :  { %595 = vsyncpa [#allocation4 + $0x1], 1 }

</bundles_post_ra>
